<compile_context>
chip_gen: v6e
topology: v6e:2x2x1
jax: 0.10.0
libtpu: 0.0.40
codegen_flags: <defaults>
</compile_context>

<pallas_src>
import functools

import jax
import jax.numpy as jnp
from jax.experimental import pallas as pl
from jax.experimental.pallas import tpu as pltpu


def _appearance_mlp_kernel(x_ref, w1_ref, b1_ref, w2_ref, b2_ref, o_ref, *,
                           col_start, d_app, normalize):
    # x_ref : (tm, d_app) when role selection happened in the index_map
    #         (col_start is None), else (tm, 2*d_app) and we slice here.
    # w1_ref: (d_app, d_hidden)   b1_ref: (1, d_hidden)  [f32]
    # w2_ref: (d_hidden, embed)   b2_ref: (1, embed)     [f32]
    # o_ref : (tm, embed)
    if col_start is None:
        x = x_ref[...]
    else:
        # Fallback path for d_app % 128 != 0 (lane-unaligned static slice).
        x = x_ref[:, col_start:col_start + d_app]

    h = jnp.dot(x, w1_ref[...], preferred_element_type=jnp.float32)
    h = jnp.maximum(h + b1_ref[...], 0.0)                 # Linear1 + bias + ReLU
    # TODO(synk): nn.Dropout is identity at inference; training-mode dropout not implemented.

    y = jnp.dot(h.astype(w2_ref.dtype), w2_ref[...],
                preferred_element_type=jnp.float32)
    y = y + b2_ref[...]                                   # Linear2 + bias

    if normalize:
        # F.normalize(y, 2, -1) == y / max(||y||_2, 1e-12); clamp the norm
        # (not sum-of-squares) to match torch exactly for tiny norms.
        norm = jnp.sqrt(jnp.sum(y * y, axis=-1, keepdims=True))
        inv = pl.reciprocal(jnp.maximum(norm, 1e-12), approx=True)
        y = y * inv

    o_ref[...] = y.astype(o_ref.dtype)


def _round_up(v, m):
    return ((v + m - 1) // m) * m


def appearance_precomp_forward(precompappearance, w1, b1, w2, b2, *,
                               name="subject", normalize=False, tile_m=512,
                               compute_dtype=jnp.bfloat16):
    """AppearancePrecomp.forward (num_layers=2, dropout in eval mode).

    precompappearance: (N, 2, d_app) for name in {'subject','object'},
                       (N, d_app)    for name == 'word'.
    w1: (d_app, d_hidden), b1: (d_hidden,), w2: (d_hidden, embed), b2: (embed,)
    Returns: (N, embed) in the input's dtype.
    """
    d_app, d_hidden = w1.shape
    embed = w2.shape[1]
    out_dtype = precompappearance.dtype

    if name == "word":
        x2d = precompappearance                            # (N, d_app)
        col_start = None
        col_block = 0
        c_block = d_app
    else:
        role = 0 if name == "subject" else 1
        N = precompappearance.shape[0]
        # Contiguous reshape: no data movement.
        x2d = precompappearance.reshape(N, 2 * d_app)
        if d_app % 128 == 0:
            # Lane-aligned: pick the role's column block directly in the
            # index_map; only d_app columns per row are DMA'd.
            col_start = None
            col_block = role
            c_block = d_app
        else:
            # Fallback: DMA both roles, slice in-kernel (correct, slower).
            col_start = role * d_app
            col_block = 0
            c_block = 2 * d_app

    N = x2d.shape[0]

    # bf16 (or requested) compute dtype for activations/weights; biases stay
    # f32 and are added to the f32 MXU accumulators.
    x2d = x2d.astype(compute_dtype)
    w1c = w1.astype(compute_dtype)
    w2c = w2.astype(compute_dtype)
    b1_2d = b1.reshape(1, d_hidden).astype(jnp.float32)
    b2_2d = b2.reshape(1, embed).astype(jnp.float32)

    # Batch tile: sublane-multiple, capped by tile_m.  Ensure >=2 grid steps
    # when N >= 16 so the parallel axis can shard across v7x's two TCs.
    tm = min(tile_m, _round_up(N, 8))
    if N >= 16:
        tm = min(tm, _round_up(pl.cdiv(N, 2), 8))
    grid = (pl.cdiv(N, tm),)

    kernel = functools.partial(
        _appearance_mlp_kernel,
        col_start=col_start, d_app=d_app, normalize=normalize)

    out = pl.pallas_call(
        kernel,
        out_shape=jax.ShapeDtypeStruct((N, embed), out_dtype),
        grid=grid,
        in_specs=[
            pl.BlockSpec((tm, c_block), lambda i: (i, col_block)),    # activations
            pl.BlockSpec((d_app, d_hidden), lambda i: (0, 0)),        # W1 (resident)
            pl.BlockSpec((1, d_hidden), lambda i: (0, 0)),            # b1
            pl.BlockSpec((d_hidden, embed), lambda i: (0, 0)),        # W2 (resident)
            pl.BlockSpec((1, embed), lambda i: (0, 0)),               # b2
        ],
        out_specs=pl.BlockSpec((tm, embed), lambda i: (i, 0)),
        compiler_params=pltpu.CompilerParams(
            dimension_semantics=("parallel",)),
    )(x2d, w1c, b1_2d, w2c, b2_2d)

    return out


def _reference(precompappearance, w1, b1, w2, b2, *, name, normalize):
    """Pure-JAX (f32) reference mirroring the PyTorch forward (eval mode)."""
    if name == "subject":
        x = precompappearance[:, 0, :]
    elif name == "object":
        x = precompappearance[:, 1, :]
    else:
        x = precompappearance
    h = jnp.maximum(x @ w1 + b1, 0.0)
    y = h @ w2 + b2
    if normalize:
        n = jnp.sqrt(jnp.sum(y * y, axis=-1, keepdims=True))
        y = y / jnp.maximum(n, 1e-12)
    return y


if __name__ == "__main__":
    key = jax.random.PRNGKey(0)
    N, d_appearance, d_hidden, embed_size = 8, 256, 256, 128

    k1, k2, k3, k4, k5, k6 = jax.random.split(key, 6)
    precomp = jax.random.uniform(
        k1, (N, 2, d_appearance), minval=-0.5, maxval=0.5, dtype=jnp.float32)
    precomp_word = jax.random.uniform(
        k6, (N, d_appearance), minval=-0.5, maxval=0.5, dtype=jnp.float32)
    s1 = 1.0 / jnp.sqrt(d_appearance)
    s2 = 1.0 / jnp.sqrt(d_hidden)
    w1 = jax.random.uniform(k2, (d_appearance, d_hidden), minval=-s1, maxval=s1)
    b1 = jax.random.uniform(k3, (d_hidden,), minval=-s1, maxval=s1)
    w2 = jax.random.uniform(k4, (d_hidden, embed_size), minval=-s2, maxval=s2)
    b2 = jax.random.uniform(k5, (embed_size,), minval=-s2, maxval=s2)

    # name='subject', normalize=False (module defaults), f32 compute: tight check.
    out_s = appearance_precomp_forward(
        precomp, w1, b1, w2, b2, name="subject", normalize=False,
        compute_dtype=jnp.float32)
    out_s = jax.block_until_ready(out_s)
    ref_s = _reference(precomp, w1, b1, w2, b2, name="subject", normalize=False)
    assert out_s.shape == (N, embed_size), out_s.shape
    assert jnp.allclose(out_s, ref_s, atol=1e-3, rtol=1e-3)

    # name='subject', bf16 compute (default fast path).
    out_sb = appearance_precomp_forward(
        precomp, w1, b1, w2, b2, name="subject", normalize=False)
    out_sb = jax.block_until_ready(out_sb)
    assert jnp.allclose(out_sb, ref_s, atol=2e-2, rtol=2e-2)

    # name='object', normalize=True (other role + F.normalize), bf16 compute.
    out_o = appearance_precomp_forward(
        precomp, w1, b1, w2, b2, name="object", normalize=True)
    out_o = jax.block_until_ready(out_o)
    ref_o = _reference(precomp, w1, b1, w2, b2, name="object", normalize=True)
    assert out_o.shape == (N, embed_size), out_o.shape
    assert jnp.allclose(out_o, ref_o, atol=2e-2, rtol=2e-2)

    # name='word' (2-D input path), bf16 compute.
    out_w = appearance_precomp_forward(
        precomp_word, w1, b1, w2, b2, name="word", normalize=False)
    out_w = jax.block_until_ready(out_w)
    ref_w = _reference(precomp_word, w1, b1, w2, b2, name="word", normalize=False)
    assert out_w.shape == (N, embed_size), out_w.shape
    assert jnp.allclose(out_w, ref_w, atol=2e-2, rtol=2e-2)

    print("KERNEL_OK")
</pallas_src>

<mosaic_0001>
module attributes {stable_mosaic.version = 11 : i64} {
  func.func @_appearance_mlp_kernel(%arg0: i32, %arg1: memref<8x256xf32, #tpu.memory_space<vmem>>, %arg2: memref<256x256xf32, #tpu.memory_space<vmem>>, %arg3: memref<1x256xf32, #tpu.memory_space<vmem>>, %arg4: memref<256x128xf32, #tpu.memory_space<vmem>>, %arg5: memref<1x128xf32, #tpu.memory_space<vmem>>, %arg6: memref<8x128xf32, #tpu.memory_space<vmem>>) attributes {dimension_semantics = [#tpu.dimension_semantics<parallel>], iteration_bounds = array<i64: 1>, scalar_prefetch = 0 : i64, scratch_operands = 0 : i64, tpu.core_type = #tpu.core_type<tc>, window_params = [{transform_indices = @transform_0, window_bounds = array<i64: 8, 256>}, {pipeline_mode = #tpu.pipeline_mode<synchronous>, transform_indices = @transform_1, window_bounds = array<i64: 256, 256>}, {pipeline_mode = #tpu.pipeline_mode<synchronous>, transform_indices = @transform_2, window_bounds = array<i64: 1, 256>}, {pipeline_mode = #tpu.pipeline_mode<synchronous>, transform_indices = @transform_3, window_bounds = array<i64: 256, 128>}, {pipeline_mode = #tpu.pipeline_mode<synchronous>, transform_indices = @transform_4, window_bounds = array<i64: 1, 128>}, {transform_indices = @transform_5, window_bounds = array<i64: 8, 128>}]} {
    %c0 = arith.constant 0 : index
    %c0_0 = arith.constant 0 : index
    %0 = vector.load %arg1[%c0, %c0_0] : memref<8x256xf32, #tpu.memory_space<vmem>>, vector<8x256xf32>
    %c0_1 = arith.constant 0 : index
    %c0_2 = arith.constant 0 : index
    %1 = vector.load %arg2[%c0_1, %c0_2] : memref<256x256xf32, #tpu.memory_space<vmem>>, vector<256x256xf32>
    %cst = arith.constant dense<0.000000e+00> : vector<8x256xf32>
    %2 = tpu.matmul %0, %1, %cst {dimension_numbers = #tpu.dot_dimension_numbers<[1], [0], [0], [1], [0, 0, 1, 1], [], []>} : vector<8x256xf32>, vector<256x256xf32>, vector<8x256xf32> -> vector<8x256xf32>
    %c0_3 = arith.constant 0 : index
    %c0_4 = arith.constant 0 : index
    %3 = vector.load %arg3[%c0_3, %c0_4] : memref<1x256xf32, #tpu.memory_space<vmem>>, vector<1x256xf32>
    %4 = vector.broadcast %3 : vector<1x256xf32> to vector<8x256xf32>
    %5 = arith.addf %2, %4 : vector<8x256xf32>
    %cst_5 = arith.constant 0.000000e+00 : f32
    %6 = vector.broadcast %cst_5 : f32 to vector<8x256xf32>
    %7 = arith.maximumf %5, %6 : vector<8x256xf32>
    %c0_6 = arith.constant 0 : index
    %c0_7 = arith.constant 0 : index
    %8 = vector.load %arg4[%c0_6, %c0_7] : memref<256x128xf32, #tpu.memory_space<vmem>>, vector<256x128xf32>
    %cst_8 = arith.constant dense<0.000000e+00> : vector<8x128xf32>
    %9 = tpu.matmul %7, %8, %cst_8 {dimension_numbers = #tpu.dot_dimension_numbers<[1], [0], [0], [1], [0, 0, 1, 1], [], []>} : vector<8x256xf32>, vector<256x128xf32>, vector<8x128xf32> -> vector<8x128xf32>
    %c0_9 = arith.constant 0 : index
    %c0_10 = arith.constant 0 : index
    %10 = vector.load %arg5[%c0_9, %c0_10] : memref<1x128xf32, #tpu.memory_space<vmem>>, vector<1x128xf32>
    %11 = vector.broadcast %10 : vector<1x128xf32> to vector<8x128xf32>
    %12 = arith.addf %9, %11 : vector<8x128xf32>
    %c0_11 = arith.constant 0 : index
    %c0_12 = arith.constant 0 : index
    %13 = vector.load %arg6[%c0_11, %c0_12] : memref<8x128xf32, #tpu.memory_space<vmem>>, vector<8x128xf32>
    tpu.vector_store %arg6[%c0_11, %c0_12], %12 {strides = array<i32>} : memref<8x128xf32, #tpu.memory_space<vmem>>, vector<8x128xf32>,
    return
  }
  func.func @transform_0(%arg0: i32) -> (i32, i32) {
    %c0_i32 = arith.constant 0 : i32
    %c0_i32_0 = arith.constant 0 : i32
    return %arg0, %c0_i32 : i32, i32
  }
  func.func @transform_1(%arg0: i32) -> (i32, i32) {
    %c0_i32 = arith.constant 0 : i32
    %c0_i32_0 = arith.constant 0 : i32
    %c0_i32_1 = arith.constant 0 : i32
    return %c0_i32, %c0_i32_0 : i32, i32
  }
  func.func @transform_2(%arg0: i32) -> (i32, i32) {
    %c0_i32 = arith.constant 0 : i32
    %c0_i32_0 = arith.constant 0 : i32
    %c0_i32_1 = arith.constant 0 : i32
    return %c0_i32, %c0_i32_0 : i32, i32
  }
  func.func @transform_3(%arg0: i32) -> (i32, i32) {
    %c0_i32 = arith.constant 0 : i32
    %c0_i32_0 = arith.constant 0 : i32
    %c0_i32_1 = arith.constant 0 : i32
    return %c0_i32, %c0_i32_0 : i32, i32
  }
  func.func @transform_4(%arg0: i32) -> (i32, i32) {
    %c0_i32 = arith.constant 0 : i32
    %c0_i32_0 = arith.constant 0 : i32
    %c0_i32_1 = arith.constant 0 : i32
    return %c0_i32, %c0_i32_0 : i32, i32
  }
  func.func @transform_5(%arg0: i32) -> (i32, i32) {
    %c0_i32 = arith.constant 0 : i32
    %c0_i32_0 = arith.constant 0 : i32
    return %arg0, %c0_i32 : i32, i32
  }
}

</mosaic_0001>

<bundles_post_ra>
// kernel: tpu_custom_call.1
= control target key start
LH: loop header
LB: loop body
LE: loop exit
PB: predicated region body
PF: predicated region fallthrough
CT: control target
= control target key end

     0   :  { %10 = vsyncpa [#allocation3], 0  ;;  %s523_s0 = inlined_call_operand.hbm [shape: f32[8,512], index: 0, kind: input, shape index: {}]   ;;  %s524_s1 = inlined_call_operand.hbm [shape: f32[256,256], index: 1, kind: input, shape index: {}]   ;;  %s525_s2 = inlined_call_operand.vmem [shape: f32[1,256], index: 2, kind: input, shape index: {}]   ;;  %s526_s3 = inlined_call_operand.hbm [shape: f32[256,128], index: 3, kind: input, shape index: {}]   ;;  %s527_s4 = inlined_call_operand.vmem [shape: f32[1,128], index: 4, kind: input, shape index: {}]   ;;  %s528_s5 = inlined_call_operand.hbm [shape: f32[8,128], index: 5, kind: output, shape index: {}]  }
   0x1   :  { %11 = vsyncpa [#allocation6], 0 }
   0x2   :  { %12 = vsyncpa [#allocation4], 0  ;;  %s467_s18 = smov [#allocation5]  }
   0x3   :  { %s28_s19 = sshll.u32 %s467_s18, 4  ;;  %s29_s19 = int_to_ptr.vmem [resolvable:$true] %s28_s19 }
   0x4   :  { %s389_s20 = scalar_lea.vmem %s29_s19, 8192  ;;  %p394_p1 = scmp.lt.s32.totalorder %s29_s19, %s29_s19 }
   0x5   :  { %p390_p0 = scmp.ne.s32.totalorder %s29_s19, %s389_s20  ;;  %p395_p2 = scmp.lt.s32.totalorder %s389_s20, %s389_s20 }
   0x7   :  { %p396_p3 = por %p395_p2, %p394_p1 }
   0x9   :  { %p397_p4 = pnand %p396_p3, %p390_p0 }
   0xb   :  { %400 = shalt.err (!%p397_p4)
}
   0xc   :  { %s468_s21 = smov 256   ;;  %s469_s22 = smov 16  }
   0xd   :  { %34 = dma.hbm_to_vmem [thread:$0]  %s524_s1, 8192, %s29_s19, [#allocation6], %s468_s21, %s468_s21, %s469_s22  }
   0xe   :  { %s470_s25 = smov [#allocation2]   ;;  %s471_s27 = smov [#allocation7]  }
   0xf   :  { %s19_s26 = sshll.u32 %s470_s25, 4  ;;  %s42_s28 = sshll.u32 %s471_s27, 4  ;;  %s20_s26 = int_to_ptr.vmem [resolvable:$true] %s19_s26  ;;  %s43_s28 = int_to_ptr.vmem [resolvable:$true] %s42_s28 }
  0x10   :  { %s409_s29 = scalar_lea.vmem %s20_s26, 256  ;;  %p414_p6 = scmp.lt.s32.totalorder %s20_s26, %s20_s26 }
  0x11   :  { %p410_p5 = scmp.ne.s32.totalorder %s20_s26, %s409_s29  ;;  %p415_p7 = scmp.lt.s32.totalorder %s409_s29, %s409_s29 }
  0x13   :  { %p416_p8 = por %p415_p7, %p414_p6 }
  0x15   :  { %p417_p9 = pnand %p416_p8, %p410_p5 }
  0x17   :  { %420 = shalt.err (!%p417_p9)
}
  0x18   :  { %22 = dma.hbm_to_vmem [thread:$0]  %s523_s0, 256, %s20_s26, [#allocation3]  }
  0x19   :  { %s429_s7 = scalar_lea.vmem %s43_s28, 4096  ;;  %p434_p11 = scmp.lt.s32.totalorder %s43_s28, %s43_s28 }
  0x1a   :  { %p430_p10 = scmp.ne.s32.totalorder %s43_s28, %s429_s7  ;;  %p435_p12 = scmp.lt.s32.totalorder %s429_s7, %s429_s7 }
  0x1c   :  { %p436_p13 = por %p435_p12, %p434_p11 }
  0x1e   :  { %p437_p0 = pnand %p436_p13, %p430_p10 }
  0x20   :  { %440 = shalt.err (!%p437_p0)
}
  0x21   :  { %s472_s1 = smov 128   ;;  %s473_s8 = smov 8  }
  0x22   :  { %48 = dma.hbm_to_vmem [thread:$0]  %s526_s3, 4096, %s43_s28, [#allocation6], %s472_s1, %s472_s1, %s473_s8  }
  0x23   :  { %461 = dma.done.wait [#allocation3], 256  }
  0x24   :  { %462 = vsyncadd [#allocation3], 4294967040 }
  0x25   :  { %463 = dma.done.wait [#allocation6], 12288  }
  0x26   :  { %464 = vsyncadd [#allocation6], 4294955008  ;;  %v93_v0 = vld [vmem:[#allocation5 + $0xf8] sm:$0xff]  ;;  %v92_v1 = vld [vmem:[#allocation5 + $0xf0] sm:$0xff]  ;;  %s474_s13 = smov [#allocation8]  }
  0x27   :  { %v91_v2 = vld [vmem:[#allocation5 + $0xe8] sm:$0xff]  ;;  %138 = vmatprep.subr.mxu0 %v93_v0  ;;  %v90_v3 = vld [vmem:[#allocation5 + $0xe0] sm:$0xff]  ;;  %v89_v4 = vld [vmem:[#allocation5 + $0xd8] sm:$0xff]  ;;  %s327_s14 = sshll.u32 %s474_s13, 4  ;;  %s328_s14 = int_to_ptr.vmem [resolvable:$true] %s327_s14 }
  0x28   :  { %139 = vmatpush1.msra.mxu0 %v92_v1  ;;  %v88_v5 = vld [vmem:[#allocation5 + $0xd0] sm:$0xff]  ;;  %v87_v6 = vld [vmem:[#allocation5 + $0xc8] sm:$0xff]  ;;  %v86_v7 = vld [vmem:[#allocation5 + $0xc0] sm:$0xff]  ;;  %p446_p2 = scmp.lt.s32.totalorder %s328_s14, %s328_s14 }
  0x29   :  { %140 = vmatprep.subr.mxu0 %v91_v2  ;;  %v85_v8 = vld [vmem:[#allocation5 + $0xb8] sm:$0xff]  ;;  %v84_v9 = vld [vmem:[#allocation5 + $0xb0] sm:$0xff]  ;;  %v83_v10 = vld [vmem:[#allocation5 + $0xa8] sm:$0xff] }
  0x2a   :  { %141 = vmatpush1.msra.mxu0 %v90_v3  ;;  %v82_v11 = vld [vmem:[#allocation5 + $0xa0] sm:$0xff]  ;;  %v81_v12 = vld [vmem:[#allocation5 + $0x98] sm:$0xff]  ;;  %v80_v13 = vld [vmem:[#allocation5 + $0x90] sm:$0xff] }
  0x2b   :  { %142 = vmatprep.subr.mxu0 %v89_v4  ;;  %v79_v14 = vld [vmem:[#allocation5 + $0x88] sm:$0xff]  ;;  %v78_v15 = vld [vmem:[#allocation5 + $0x80] sm:$0xff]  ;;  %v77_v16 = vld [vmem:[#allocation5 + $0x78] sm:$0xff] }
  0x2c   :  { %143 = vmatpush1.msra.mxu0 %v88_v5  ;;  %v76_v17 = vld [vmem:[#allocation5 + $0x70] sm:$0xff]  ;;  %v75_v18 = vld [vmem:[#allocation5 + $0x68] sm:$0xff]  ;;  %v74_v19 = vld [vmem:[#allocation5 + $0x60] sm:$0xff] }
  0x2d   :  { %144 = vmatprep.subr.mxu0 %v87_v6  ;;  %v73_v20 = vld [vmem:[#allocation5 + $0x58] sm:$0xff]  ;;  %v72_v21 = vld [vmem:[#allocation5 + $0x50] sm:$0xff]  ;;  %v71_v22 = vld [vmem:[#allocation5 + $0x48] sm:$0xff] }
  0x2e   :  { %145 = vmatpush1.msra.mxu0 %v86_v7  ;;  %v70_v23 = vld [vmem:[#allocation5 + $0x40] sm:$0xff]  ;;  %v69_v24 = vld [vmem:[#allocation5 + $0x38] sm:$0xff]  ;;  %v241_v28 = vld [vmem:[#allocation7 + $0xf0] sm:$0xff] }
  0x2f   :  { %146 = vmatprep.subr.mxu0 %v85_v8  ;;  %v61_v25 = vld [vmem:[#allocation2 + $0x8] sm:$0xff]  ;;  %v68_v29 = vld [vmem:[#allocation5 + $0x30] sm:$0xff]  ;;  %v67_v31 = vld [vmem:[#allocation5 + $0x28] sm:$0xff] }
  0x30   :  { %147 = vmatpush1.msra.mxu0 %v84_v9  ;;  %202 = vmatprep.mubr.f32.mxu0 %v61_v25  ;;  %v242_v26 = vld [vmem:[#allocation7 + $0xf8] sm:$0xff]  ;;  %v225_v30 = vld [vmem:[#allocation7 + $0x70] sm:$0xff]  ;;  %v240_v32 = vld [vmem:[#allocation7 + $0xe8] sm:$0xff] }
  0x31   :  { %148 = vmatprep.subr.mxu0 %v83_v10  ;;  %v226_v27 = vld [vmem:[#allocation7 + $0x78] sm:$0xff]  ;;  %338 = vmatprep.subr.mxu1 %v242_v26  ;;  %v66_v33 = vld [vmem:[#allocation5 + $0x20] sm:$0xff]  ;;  %v224_v34 = vld [vmem:[#allocation7 + $0x68] sm:$0xff] }
  0x32   :  { %149 = vmatpush1.msra.mxu0 %v82_v11  ;;  %339 = vmatpush3.msra.mxu1 %v226_v27  ;;  %v65_v35 = vld [vmem:[#allocation5 + $0x18] sm:$0xff]  ;;  %v239_v36 = vld [vmem:[#allocation7 + $0xe0] sm:$0xff]  ;;  %v64_v37 = vld [vmem:[#allocation5 + $0x10] sm:$0xff] }
  0x33   :  { %150 = vmatprep.subr.mxu0 %v81_v12  ;;  %340 = vmatprep.subr.mxu1 %v241_v28  ;;  %v223_v38 = vld [vmem:[#allocation7 + $0x60] sm:$0xff]  ;;  %v63_v39 = vld [vmem:[#allocation5 + $0x8] sm:$0xff]  ;;  %v238_v40 = vld [vmem:[#allocation7 + $0xd8] sm:$0xff] }
  0x34   :  { %151 = vmatpush1.msra.mxu0 %v80_v13  ;;  %341 = vmatpush3.msra.mxu1 %v225_v30  ;;  %v62_v41 = vld [vmem:[#allocation5] sm:$0xff]  ;;  %v222_v42 = vld [vmem:[#allocation7 + $0x58] sm:$0xff]  ;;  %v237_v44 = vld [vmem:[#allocation7 + $0xd0] sm:$0xff] }
  0x35   :  { %152 = vmatprep.subr.mxu0 %v79_v14  ;;  %342 = vmatprep.subr.mxu1 %v240_v32  ;;  %v125_v43 = vld [vmem:[#allocation5 + $0x1f8] sm:$0xff]  ;;  %v124_v45 = vld [vmem:[#allocation5 + $0x1f0] sm:$0xff]  ;;  %v123_v47 = vld [vmem:[#allocation5 + $0x1e8] sm:$0xff] }
  0x36   :  { %153 = vmatpush1.msra.mxu0 %v78_v15  ;;  %343 = vmatpush3.msra.mxu1 %v224_v34  ;;  %v221_v46 = vld [vmem:[#allocation7 + $0x50] sm:$0xff]  ;;  %v236_v48 = vld [vmem:[#allocation7 + $0xc8] sm:$0xff]  ;;  %v122_v49 = vld [vmem:[#allocation5 + $0x1e0] sm:$0xff]  ;;  %v128_v34 = vlaneseq }
  0x37   :  { %154 = vmatprep.subr.mxu0 %v77_v16  ;;  %344 = vmatprep.subr.mxu1 %v239_v36  ;;  %v220_v50 = vld [vmem:[#allocation7 + $0x48] sm:$0xff]  ;;  %v121_v51 = vld [vmem:[#allocation5 + $0x1d8] sm:$0xff]  ;;  %v235_v52 = vld [vmem:[#allocation7 + $0xc0] sm:$0xff] }
  0x38   :  { %155 = vmatpush1.msra.mxu0 %v76_v17  ;;  %345 = vmatpush3.msra.mxu1 %v223_v38  ;;  %v120_v53 = vld [vmem:[#allocation5 + $0x1d0] sm:$0xff]  ;;  %v219_v54 = vld [vmem:[#allocation7 + $0x40] sm:$0xff]  ;;  %v119_v55 = vld [vmem:[#allocation5 + $0x1c8] sm:$0xff] }
  0x39   :  { %156 = vmatprep.subr.mxu0 %v75_v18  ;;  %346 = vmatprep.subr.mxu1 %v238_v40  ;;  %v234_v56 = vld [vmem:[#allocation7 + $0xb8] sm:$0xff]  ;;  %v118_v57 = vld [vmem:[#allocation5 + $0x1c0] sm:$0xff]  ;;  %v233_v60 = vld [vmem:[#allocation7 + $0xb0] sm:$0xff] }
  0x3a   :  { %157 = vmatpush1.msra.mxu0 %v74_v19  ;;  %347 = vmatpush3.msra.mxu1 %v222_v42  ;;  %v218_v58 = vld [vmem:[#allocation7 + $0x38] sm:$0xff]  ;;  %v116_v61 = vld [vmem:[#allocation5 + $0x1b0] sm:$0xff]  ;;  %v115_v63 = vld [vmem:[#allocation5 + $0x1a8] sm:$0xff] }
  0x3b   :  { %158 = vmatprep.subr.mxu0 %v73_v20  ;;  %348 = vmatprep.subr.mxu1 %v237_v44  ;;  %v117_v59 = vld [vmem:[#allocation5 + $0x1b8] sm:$0xff]  ;;  %v217_v62 = vld [vmem:[#allocation7 + $0x30] sm:$0xff]  ;;  %v232_v0 = vld [vmem:[#allocation7 + $0xa8] sm:$0xff] }
  0x3c   :  { %159 = vmatpush1.msra.mxu0 %v72_v21  ;;  %349 = vmatpush3.msra.mxu1 %v221_v46  ;;  %v114_v1 = vld [vmem:[#allocation5 + $0x1a0] sm:$0xff]  ;;  %v216_v2 = vld [vmem:[#allocation7 + $0x28] sm:$0xff]  ;;  %v113_v3 = vld [vmem:[#allocation5 + $0x198] sm:$0xff] }
  0x3d   :  { %160 = vmatprep.subr.mxu0 %v71_v22  ;;  %350 = vmatprep.subr.mxu1 %v236_v48  ;;  %v231_v4 = vld [vmem:[#allocation7 + $0xa0] sm:$0xff]  ;;  %v112_v5 = vld [vmem:[#allocation5 + $0x190] sm:$0xff]  ;;  %v111_v7 = vld [vmem:[#allocation5 + $0x188] sm:$0xff] }
  0x3e   :  { %161 = vmatpush1.msra.mxu0 %v70_v23  ;;  %351 = vmatpush3.msra.mxu1 %v220_v50  ;;  %v215_v6 = vld [vmem:[#allocation7 + $0x20] sm:$0xff]  ;;  %v109_v9 = vld [vmem:[#allocation5 + $0x178] sm:$0xff]  ;;  %v108_v10 = vld [vmem:[#allocation5 + $0x170] sm:$0xff] }
  0x3f   :  { %162 = vmatprep.subr.mxu0 %v69_v24  ;;  %352 = vmatprep.subr.mxu1 %v235_v52  ;;  %v110_v8 = vld [vmem:[#allocation5 + $0x180] sm:$0xff]  ;;  %v107_v11 = vld [vmem:[#allocation5 + $0x168] sm:$0xff]  ;;  %v105_v13 = vld [vmem:[#allocation5 + $0x158] sm:$0xff] }
  0x40   :  { %163 = vmatpush1.msra.mxu0 %v68_v29  ;;  %353 = vmatpush3.msra.mxu1 %v219_v54  ;;  %v106_v12 = vld [vmem:[#allocation5 + $0x160] sm:$0xff]  ;;  %v104_v14 = vld [vmem:[#allocation5 + $0x150] sm:$0xff]  ;;  %v103_v15 = vld [vmem:[#allocation5 + $0x148] sm:$0xff] }
  0x41   :  { %164 = vmatprep.subr.mxu0 %v67_v31  ;;  %354 = vmatprep.subr.mxu1 %v234_v56  ;;  %v102_v16 = vld [vmem:[#allocation5 + $0x140] sm:$0xff]  ;;  %v101_v17 = vld [vmem:[#allocation5 + $0x138] sm:$0xff]  ;;  %v100_v18 = vld [vmem:[#allocation5 + $0x130] sm:$0xff] }
  0x42   :  { %165 = vmatpush1.msra.mxu0 %v66_v33  ;;  %355 = vmatpush3.msra.mxu1 %v218_v58  ;;  %v99_v19 = vld [vmem:[#allocation5 + $0x128] sm:$0xff]  ;;  %v98_v20 = vld [vmem:[#allocation5 + $0x120] sm:$0xff]  ;;  %v97_v21 = vld [vmem:[#allocation5 + $0x118] sm:$0xff] }
  0x43   :  { %166 = vmatprep.subr.mxu0 %v65_v35  ;;  %356 = vmatprep.subr.mxu1 %v233_v60  ;;  %v96_v22 = vld [vmem:[#allocation5 + $0x110] sm:$0xff]  ;;  %v95_v23 = vld [vmem:[#allocation5 + $0x108] sm:$0xff]  ;;  %v94_v24 = vld [vmem:[#allocation5 + $0x100] sm:$0xff]  ;;  %v129_v35 = vshrl.u32 %v128_v34, 7 }
  0x44   :  { %167 = vmatpush1.msra.mxu0 %v64_v37  ;;  %357 = vmatpush3.msra.mxu1 %v217_v62  ;;  %v60_v25 = vld [vmem:[#allocation2] sm:$0xff]  ;;  %v230_v26 = vld [vmem:[#allocation7 + $0x98] sm:$0xff]  ;;  %v228_v30 = vld [vmem:[#allocation7 + $0x88] sm:$0xff] }
  0x45   :  { %168 = vmatprep.subr.mxu0 %v63_v39  ;;  %358 = vmatprep.subr.mxu1 %v232_v0  ;;  %v214_v27 = vld [vmem:[#allocation7 + $0x18] sm:$0xff]  ;;  %v229_v28 = vld [vmem:[#allocation7 + $0x90] sm:$0xff]  ;;  %v212_v31 = vld [vmem:[#allocation7 + $0x8] sm:$0xff]  ;;  %v130_v36 = vsub.s32 0, %v129_v35  ;;  %v134_v38 = vsub.s32 1, %v129_v35 }
  0x46   :  { %169 = vmatpush1.msra.mxu0 %v62_v41  ;;  %359 = vmatpush3.msra.mxu1 %v216_v2  ;;  %v213_v29 = vld [vmem:[#allocation7 + $0x10] sm:$0xff]  ;;  %v227_v32 = vld [vmem:[#allocation7 + $0x80] sm:$0xff] }
  0x47   :  { %170 = vmatprep.subr.mxu0 %v125_v43  ;;  %360 = vmatprep.subr.mxu1 %v231_v4  ;;  %v211_v33 = vld [vmem:[#allocation7] sm:$0xff]  ;;  %v126_v37 = vld [vmem:[%s525_s2] sm:$0x3]  ;;  %s441_s2 = scalar_lea.vmem %s328_s14, 128 }
  0x48   :  { %171 = vmatpush2.msra.mxu0 %v124_v45  ;;  %361 = vmatpush3.msra.mxu1 %v215_v6  ;;  %v131_v39 = vrot.slane %v126_v37, %v130_v36  ;;  %v135_v40 = vrot.slane %v126_v37, %v134_v38  ;;  %v337_v48 = vld [vmem:[%s527_s4] ss:$0 sm:$0xff]  ;;  %p442_p1 = scmp.ne.s32.totalorder %s328_s14, %s441_s2  ;;  %p447_p3 = scmp.lt.s32.totalorder %s441_s2, %s441_s2 }
  0x49   :  { %172 = vmatprep.subr.mxu0 %v123_v47  ;;  %362 = vmatprep.subr.mxu1 %v230_v26 }
  0x4a   :  { %173 = vmatpush2.msra.mxu0 %v122_v49  ;;  %363 = vmatpush3.msra.mxu1 %v214_v27  ;;  %p448_p4 = por %p447_p3, %p446_p2 }
  0x4b   :  { %174 = vmatprep.subr.mxu0 %v121_v51  ;;  %364 = vmatprep.subr.mxu1 %v229_v28 }
  0x4c   :  { %175 = vmatpush2.msra.mxu0 %v120_v53  ;;  %365 = vmatpush3.msra.mxu1 %v213_v29  ;;  %p449_p5 = pnand %p448_p4, %p442_p1 }
  0x4d   :  { %176 = vmatprep.subr.mxu0 %v119_v55  ;;  %366 = vmatprep.subr.mxu1 %v228_v30 }
  0x4e   :  { %177 = vmatpush2.msra.mxu0 %v118_v57  ;;  %367 = vmatpush3.msra.mxu1 %v212_v31 }
  0x4f   :  { %178 = vmatprep.subr.mxu0 %v117_v59  ;;  %368 = vmatprep.subr.mxu1 %v227_v32 }
  0x50   :  { %179 = vmatpush2.msra.mxu0 %v116_v61  ;;  %369 = vmatpush3.msra.mxu1 %v211_v33 }
  0x51   :  { %180 = vmatprep.subr.mxu0 %v115_v63 }
  0x52   :  { %181 = vmatpush2.msra.mxu0 %v114_v1 }
  0x53   :  { %182 = vmatprep.subr.mxu0 %v113_v3 }
  0x54   :  { %183 = vmatpush2.msra.mxu0 %v112_v5 }
  0x55   :  { %184 = vmatprep.subr.mxu0 %v111_v7 }
  0x56   :  { %185 = vmatpush2.msra.mxu0 %v110_v8 }
  0x57   :  { %186 = vmatprep.subr.mxu0 %v109_v9 }
  0x58   :  { %187 = vmatpush2.msra.mxu0 %v108_v10 }
  0x59   :  { %188 = vmatprep.subr.mxu0 %v107_v11 }
  0x5a   :  { %189 = vmatpush2.msra.mxu0 %v106_v12 }
  0x5b   :  { %190 = vmatprep.subr.mxu0 %v105_v13 }
  0x5c   :  { %191 = vmatpush2.msra.mxu0 %v104_v14 }
  0x5d   :  { %192 = vmatprep.subr.mxu0 %v103_v15 }
  0x5e   :  { %193 = vmatpush2.msra.mxu0 %v102_v16 }
  0x5f   :  { %194 = vmatprep.subr.mxu0 %v101_v17 }
  0x60   :  { %195 = vmatpush2.msra.mxu0 %v100_v18 }
  0x61   :  { %196 = vmatprep.subr.mxu0 %v99_v19 }
  0x62   :  { %197 = vmatpush2.msra.mxu0 %v98_v20 }
  0x63   :  { %198 = vmatprep.subr.mxu0 %v97_v21 }
  0x64   :  { %199 = vmatpush2.msra.mxu0 %v96_v22 }
  0x65   :  { %200 = vmatprep.subr.mxu0 %v95_v23 }
  0x66   :  { %201 = vmatpush2.msra.mxu0 %v94_v24 }
  0x67   :  { %203 = vmatmul.mubr.f32.vlgmr.msra.gmra.mxu0 %v60_v25 }
 0x127   :  { %v204_v41 = vpop.f32.mrf.mxu0 }
 0x128   :  { %v205_v42 = vadd.f32 %v204_v41, %v131_v39 }
 0x129   :  { %v206_v43 = vpop.f32.mrf.mxu0 }
 0x12a   :  { %v207_v44 = vadd.f32 %v206_v43, %v135_v40  ;;  %v209_v46 = vmax.f32 %v205_v42, 0.0 }
 0x12c   :  { %v210_v45 = vmax.f32 %v207_v44, 0.0 }
 0x12e   :  { %314 = vmatprep.mubr.f32.mxu1 %v210_v45 }
 0x12f   :  { %315 = vmatmul.mubr.f32.vlgmr.msra.gmra.mxu1 %v209_v46 }
 0x1ef   :  { %v370_v47 = vpop.f32.mrf.mxu1 }
 0x1f1   :  { %v371_v49 = vpop.f32.mrf.mxu1 }
 0x1f2   :  { %v372_v50 = vadd.f32 %v371_v49, %v370_v47 }
 0x1f4   :  { %v317_v51 = vadd.f32 %v372_v50, %v337_v48 }
 0x1f6   :  { %320 = vst [vmem:[#allocation8] sm:$0xff] %v317_v51 }
 0x1f7   :  { %452 = shalt.err (!%p449_p5)
}
 0x1f8   :  { %330 = dma.vmem_to_hbm [thread:$0]  %s328_s14, 128, %s528_s5, [#allocation4]  }
 0x1f9   :  { %465 = dma.done.wait [#allocation4], 128  }
 0x1fa   :  { %466 = vsyncadd [#allocation4], 4294967168 }
 0x1fb   :  { %334 = vsyncpa [#allocation3], 1 }
 0x1fc   :  { %335 = vsyncpa [#allocation6], 1 }
 0x1fd   :  { %336 = vsyncpa [#allocation4], 1 }

</bundles_post_ra>
